<compile_context>
chip_gen: v5e
topology: v5e:2x2
jax: 0.10.0
libtpu: 0.0.40
codegen_flags: <defaults>
</compile_context>

<pallas_src>
import jax
import jax.numpy as jnp
from jax.experimental import pallas as pl
from jax.experimental.pallas import tpu as pltpu

LANES = 128  # vreg lane width


def logreg_kernel(w_ref, b_ref, x_ref, o_ref):
    # w_ref / b_ref: (1,) f32 scalars in SMEM (scalar-prefetched).
    # x_ref / o_ref: (block_rows, 128) f32 tiles in VMEM.
    w = w_ref[0]
    b = b_ref[0]
    z = x_ref[...] * w + b
    # sigmoid(z) = 0.5 * (tanh(z / 2) + 1): one EUP transcendental per element,
    # numerically stable for large |z|.
    o_ref[...] = 0.5 * jnp.tanh(0.5 * z) + 0.5


def _choose_block_rows(total_rows: int) -> int:
    # Bias toward large tiles (512-1024 rows); a 1024x128 f32 tile is 512 KiB,
    # comfortably inside every chip's double-buffered VMEM budget.
    for br in (1024, 512, 256, 128, 64, 32, 16, 8):
        if total_rows >= br:
            return br
    return 8  # tiny inputs: pad up to one aligned (8, 128) tile


def logistic_regression(x, weight, bias):
    """x: (N, 1); weight: (1, 1); bias: (1,)  ->  (N, 1) sigmoid(x @ w.T + b)."""
    N, D = x.shape
    assert D == 1
    w_flat = weight.reshape((1,)).astype(jnp.float32)
    b_flat = bias.reshape((1,)).astype(jnp.float32)

    # Lane-dense repack: (N, 1) -> padded (rows, 128).
    total_rows = pl.cdiv(N, LANES)
    block_rows = _choose_block_rows(total_rows)
    padded_rows = pl.cdiv(total_rows, block_rows) * block_rows
    n_pad = padded_rows * LANES

    x_flat = x.reshape((-1,)).astype(jnp.float32)
    x2d = jnp.pad(x_flat, (0, n_pad - N)).reshape((padded_rows, LANES))

    grid_spec = pltpu.PrefetchScalarGridSpec(
        num_scalar_prefetch=2,  # weight, bias -> SMEM scalars
        grid=(padded_rows // block_rows,),
        in_specs=[
            pl.BlockSpec((block_rows, LANES), lambda i, w, b: (i, 0)),
        ],
        out_specs=pl.BlockSpec((block_rows, LANES), lambda i, w, b: (i, 0)),
    )

    out2d = pl.pallas_call(
        logreg_kernel,
        out_shape=jax.ShapeDtypeStruct((padded_rows, LANES), jnp.float32),
        grid_spec=grid_spec,
        compiler_params=pltpu.CompilerParams(
            dimension_semantics=("parallel",),
        ),
    )(w_flat, b_flat, x2d)

    # Undo the lane-dense repack outside the kernel.
    return out2d.reshape((-1,))[:N].reshape((N, 1)).astype(x.dtype)


if __name__ == "__main__":
    key = jax.random.PRNGKey(0)
    kx, kw, kb = jax.random.split(key, 3)

    # 200 samples in [0, 10], single feature (mirrors np.linspace(0, 10, 200)).
    N = 200
    x = jax.random.uniform(kx, (N, 1), dtype=jnp.float32) * 10.0

    # torch.nn.Linear(1, 1) init: uniform(-1/sqrt(in), +1/sqrt(in)) = U(-1, 1).
    weight = jax.random.uniform(kw, (1, 1), dtype=jnp.float32, minval=-1.0, maxval=1.0)
    bias = jax.random.uniform(kb, (1,), dtype=jnp.float32, minval=-1.0, maxval=1.0)

    y = logistic_regression(x, weight, bias)
    y = jax.block_until_ready(y)

    # Pure-JAX reference check of the forward pass.
    y_ref = jax.nn.sigmoid(x @ weight.T + bias)
    assert y.shape == (N, 1)
    assert jnp.allclose(y, y_ref, atol=2e-6, rtol=1e-5)

    print("KERNEL_OK")
</pallas_src>

<mosaic_0001>
module attributes {stable_mosaic.version = 11 : i64} {
  func.func @logreg_kernel(%arg0: i32, %arg1: memref<1xf32, #tpu.memory_space<smem>>, %arg2: memref<1xf32, #tpu.memory_space<smem>>, %arg3: memref<8x128xf32, #tpu.memory_space<vmem>>, %arg4: memref<8x128xf32, #tpu.memory_space<vmem>>) attributes {dimension_semantics = [#tpu.dimension_semantics<parallel>], iteration_bounds = array<i64: 1>, scalar_prefetch = 2 : i64, scratch_operands = 0 : i64, tpu.core_type = #tpu.core_type<tc>, window_params = [{transform_indices = @transform_0, window_bounds = array<i64: 8, 128>}, {transform_indices = @transform_1, window_bounds = array<i64: 8, 128>}]} {
    %c0 = arith.constant 0 : index
    %0 = memref.load %arg1[%c0] : memref<1xf32, #tpu.memory_space<smem>>
    %c0_0 = arith.constant 0 : index
    %1 = memref.load %arg2[%c0_0] : memref<1xf32, #tpu.memory_space<smem>>
    %c0_1 = arith.constant 0 : index
    %c0_2 = arith.constant 0 : index
    %2 = vector.load %arg3[%c0_1, %c0_2] : memref<8x128xf32, #tpu.memory_space<vmem>>, vector<8x128xf32>
    %3 = vector.broadcast %0 : f32 to vector<8x128xf32>
    %4 = arith.mulf %2, %3 : vector<8x128xf32>
    %5 = vector.broadcast %1 : f32 to vector<8x128xf32>
    %6 = arith.addf %4, %5 : vector<8x128xf32>
    %cst = arith.constant 5.000000e-01 : f32
    %7 = vector.broadcast %cst : f32 to vector<8x128xf32>
    %8 = arith.mulf %7, %6 : vector<8x128xf32>
    %9 = math.tanh %8 : vector<8x128xf32>
    %cst_3 = arith.constant 5.000000e-01 : f32
    %10 = vector.broadcast %cst_3 : f32 to vector<8x128xf32>
    %11 = arith.mulf %10, %9 : vector<8x128xf32>
    %cst_4 = arith.constant 5.000000e-01 : f32
    %12 = vector.broadcast %cst_4 : f32 to vector<8x128xf32>
    %13 = arith.addf %11, %12 : vector<8x128xf32>
    %c0_5 = arith.constant 0 : index
    %c0_6 = arith.constant 0 : index
    %14 = vector.load %arg4[%c0_5, %c0_6] : memref<8x128xf32, #tpu.memory_space<vmem>>, vector<8x128xf32>
    tpu.vector_store %arg4[%c0_5, %c0_6], %13 {strides = array<i32>} : memref<8x128xf32, #tpu.memory_space<vmem>>, vector<8x128xf32>,
    return
  }
  func.func @transform_0(%arg0: i32, %arg1: memref<1xf32, #tpu.memory_space<smem>>, %arg2: memref<1xf32, #tpu.memory_space<smem>>) -> (i32, i32) {
    %c0_i32 = arith.constant 0 : i32
    %c0_i32_0 = arith.constant 0 : i32
    return %arg0, %c0_i32 : i32, i32
  }
  func.func @transform_1(%arg0: i32, %arg1: memref<1xf32, #tpu.memory_space<smem>>, %arg2: memref<1xf32, #tpu.memory_space<smem>>) -> (i32, i32) {
    %c0_i32 = arith.constant 0 : i32
    %c0_i32_0 = arith.constant 0 : i32
    return %arg0, %c0_i32 : i32, i32
  }
}

</mosaic_0001>

<bundles_post_ra>
// kernel: tpu_custom_call.1
= control target key start
LH: loop header
LB: loop body
LE: loop exit
PB: predicated region body
PF: predicated region fallthrough
CT: control target
= control target key end

     0   :  { %10 = vsyncpa [#allocation6], 0  ;;  %s146_s0 = inlined_call_operand.<no memory space> [shape: f32[1], index: 0, kind: input, shape index: {}]   ;;  %s147_s1 = inlined_call_operand.<no memory space> [shape: f32[1], index: 1, kind: input, shape index: {}]   ;;  %s148_s2 = inlined_call_operand.hbm [shape: f32[8,128], index: 2, kind: input, shape index: {}]   ;;  %s149_s3 = inlined_call_operand.hbm [shape: f32[8,128], index: 3, kind: output, shape index: {}]  }
   0x1   :  { %11 = vsyncpa [#allocation7], 0  ;;  %s17_s14 = sshll.u32 %s148_s2, 4  ;;  %s112_s15 = smov [#allocation5]   ;;  %s18_s14 = int_to_ptr.hbm [resolvable:$true] %s17_s14 }
   0x2   :  { %s19_s16 = sshll.u32 %s112_s15, 4  ;;  %s20_s16 = int_to_ptr.vmem [resolvable:$true] %s19_s16 }
   0x3   :  { %22 = dma.hbm_to_vmem [thread:$0]  %s18_s14, 128, %s20_s16, [#allocation6]  }
   0x4   :  { %108 = dma.done.wait [#allocation6], 128  }
   0x5   :  { %109 = vsyncadd [#allocation6], 4294967168  ;;  %v30_v0 = vstv %s146_s0  ;;  %v29_v1 = vld [vmem:[#allocation5] sm:$0xff]  ;;  %v32_v2 = vstv %s147_s1  ;;  %s113_s2 = smov [#allocation8]   ;;  %s46_s24 = sshll.u32 %s149_s3, 4  ;;  %s47_s24 = int_to_ptr.hbm [resolvable:$true] %s46_s24 }
   0x6   :  { %v31_v3 = vmul.f32 %v30_v0, %v29_v1  ;;  %s44_s21 = sshll.u32 %s113_s2, 4  ;;  %s45_s21 = int_to_ptr.vmem [resolvable:$true] %s44_s21 }
   0x8   :  { %v33_v4 = vadd.f32 %v32_v2, %v31_v3 }
   0xa   :  { %v34_v5 = vmul.f32 0.5, %v33_v4 }
   0xc   :  { %58 = vtanh.f32 %v34_v5 }
  0x12   :  { %v59_v6 = vpop.eup %58 }
  0x13   :  { %v36_v7 = vmul.f32 0.5, %v59_v6 }
  0x15   :  { %v37_v8 = vadd.f32 0.5, %v36_v7 }
  0x17   :  { %38 = vst [vmem:[#allocation8] sm:$0xff] %v37_v8 }
  0x18   :  { %49 = dma.vmem_to_hbm [thread:$0]  %s45_s21, 128, %s47_s24, [#allocation7]  }
  0x19   :  { %110 = dma.done.wait [#allocation7], 128  }
  0x1a   :  { %111 = vsyncadd [#allocation7], 4294967168 }
  0x1b   :  { %54 = vsyncpa [#allocation6], 1 }
  0x1c   :  { %55 = vsyncpa [#allocation7], 1 }

</bundles_post_ra>
